<compile_context>
chip_gen: v7x
topology: tpu7x:2x2x1
jax: 0.10.0
libtpu: 0.0.40
codegen_flags: <defaults>
</compile_context>

<pallas_src>
import functools

import jax
import jax.numpy as jnp
from jax.experimental import pallas as pl
from jax.experimental.pallas import tpu as pltpu


def _round_up(x: int, m: int) -> int:
    return ((x + m - 1) // m) * m


# ----------------------------------------------------------------------------
# Kernel
# ----------------------------------------------------------------------------
def _make_critic_kernel(num_hidden_layers: int, compute_dtype):
    """Fused MLP kernel: split first layer (+relu), N hidden (+relu), output."""

    def kernel(s_ref, a_ref, g_ref, *rest):
        # rest = (w_s, w_a, w_g, b_in, [w_h, b_h]*L, w_out, b_out, o_ref)
        o_ref = rest[-1]
        params = rest[:-1]

        f32 = jnp.float32
        cdt = compute_dtype

        # --- input layer: fused concat as a row-split matmul, f32 accumulation.
        #     Inputs are cast f32 -> bf16 in-kernel (cheap VPU op under the MXU).
        w_s, w_a, w_g, b_in = params[0], params[1], params[2], params[3]
        h = (jnp.dot(s_ref[...].astype(cdt), w_s[...], preferred_element_type=f32)
             + jnp.dot(a_ref[...].astype(cdt), w_a[...], preferred_element_type=f32)
             + jnp.dot(g_ref[...].astype(cdt), w_g[...], preferred_element_type=f32)
             + b_in[...])
        h = jnp.maximum(h, 0.0)

        # --- hidden layers + relu (matmul operands bf16, bias/relu in f32)
        idx = 4
        for _ in range(num_hidden_layers):
            w, b = params[idx], params[idx + 1]
            h = jnp.dot(h.astype(cdt), w[...], preferred_element_type=f32) + b[...]
            h = jnp.maximum(h, 0.0)
            idx += 2

        # --- output layer (no activation), stored directly at true out_dim
        w_out, b_out = params[idx], params[idx + 1]
        out = jnp.dot(h.astype(cdt), w_out[...],
                      preferred_element_type=f32) + b_out[...]
        o_ref[...] = out.astype(o_ref.dtype)

    return kernel


# ----------------------------------------------------------------------------
# Wrapper
# ----------------------------------------------------------------------------
def critic_forward(state, action, goal, prep_params, *, num_hidden_layers: int,
                   out_dim: int, tile_m: int = 1024,
                   compute_dtype=jnp.bfloat16):
    """Runs the Critic forward pass.

    prep_params (from prepare_critic_params):
      [w_s, w_a, w_g, b_in, (w_h, b_h) * num_hidden_layers, w_out, b_out]
    Weights are (in, out) in compute_dtype, biases are (1, out) f32. The hidden
    dim is zero-padded to a multiple of 128; the output dim is NOT padded.
    """
    batch = state.shape[0]
    hidden_pad = prep_params[3].shape[-1]
    d_in = state.shape[1] + action.shape[1] + goal.shape[1]

    # Batch tile: full array when tiny (no (8,128) constraint applies), else a
    # multiple of 8, capped at tile_m, and chosen so the batch axis has >=2
    # grid steps whenever possible (v7x: shards work across both TensorCores).
    if batch <= 8:
        tm = batch
    else:
        tm = min(tile_m, _round_up(pl.cdiv(batch, 2), 8))
    grid = (pl.cdiv(batch, tm),)

    def row_spec(feat):
        return pl.BlockSpec((tm, feat), lambda i: (i, 0))

    # Constant-index weights: fetched once, VMEM-resident across the whole grid.
    # At large hidden sizes a second pipeline buffer is pure VMEM waste, so
    # drop to single-buffering (not exercised by the small demo shapes).
    single_buffer = hidden_pad >= 1024

    def resident_spec(p):
        kwargs = {}
        if single_buffer:
            kwargs["pipeline_mode"] = pl.Buffered(1)
        return pl.BlockSpec(p.shape, lambda i: (0, 0), **kwargs)

    in_specs = [row_spec(state.shape[1]), row_spec(action.shape[1]),
                row_spec(goal.shape[1])]
    in_specs += [resident_spec(p) for p in prep_params]
    out_spec = pl.BlockSpec((tm, out_dim), lambda i: (i, 0))

    # --- advisory cost + VMEM sizing -----------------------------------------
    param_bytes = sum(int(p.size) * p.dtype.itemsize for p in prep_params)
    flops = 2 * batch * (d_in * hidden_pad
                         + num_hidden_layers * hidden_pad * hidden_pad
                         + hidden_pad * out_dim)
    bytes_accessed = param_bytes
    for arr in (state, action, goal):
        bytes_accessed += int(arr.size) * arr.dtype.itemsize
    bytes_accessed += batch * out_dim * 4

    weight_buffers = 1 if single_buffer else 2
    est_vmem = (weight_buffers * param_bytes
                + 2 * tm * (d_in + out_dim) * 4        # pipelined in/out buffers
                + 6 * tm * hidden_pad * 4)             # activation temporaries
    cp_kwargs = dict(dimension_semantics=("parallel",))
    if est_vmem > (16 << 20):
        cp_kwargs["vmem_limit_bytes"] = int(min(est_vmem * 5 // 4, 100 << 20))

    fn = pl.pallas_call(
        _make_critic_kernel(num_hidden_layers, compute_dtype),
        out_shape=jax.ShapeDtypeStruct((batch, out_dim), jnp.float32),
        grid=grid,
        in_specs=in_specs,
        out_specs=out_spec,
        compiler_params=pltpu.CompilerParams(**cp_kwargs),
        cost_estimate=pl.CostEstimate(flops=int(flops), transcendentals=0,
                                      bytes_accessed=int(bytes_accessed)),
    )
    return fn(state, action, goal, *prep_params)


# ----------------------------------------------------------------------------
# Parameter construction (PyTorch-Linear-style), then kernel-friendly prep
# ----------------------------------------------------------------------------
def init_critic_params(key, input_size, hidden_size, hidden_layers, output_size):
    """PyTorch-equivalent params: [w_in, b_in, (w_h, b_h)*L, w_out, b_out], f32."""

    def linear(key, fan_in, fan_out):
        kw, kb = jax.random.split(key)
        bound = 1.0 / jnp.sqrt(jnp.float32(fan_in))
        w = jax.random.uniform(kw, (fan_in, fan_out), jnp.float32, -bound, bound)
        b = jax.random.uniform(kb, (1, fan_out), jnp.float32, -bound, bound)
        return w, b

    keys = jax.random.split(key, hidden_layers + 2)
    params = []
    w, b = linear(keys[0], input_size, hidden_size)
    params += [w, b]
    for i in range(hidden_layers):
        w, b = linear(keys[1 + i], hidden_size, hidden_size)
        params += [w, b]
    w, b = linear(keys[-1], hidden_size, output_size)
    params += [w, b]
    # TODO(synk): self.linear2 exists in the PyTorch module but is never used in
    # forward, so it is intentionally omitted.
    return params


def prepare_critic_params(params, state_dim, action_dim, goal_dim,
                          *, weight_dtype=jnp.bfloat16):
    """Split W_in by input rows, zero-pad hidden dim to a 128 multiple, cast.

    Zero-padding the hidden dim is numerically inert: padded activation columns
    are relu(0) = 0 and padded weight rows are 0, so real outputs are unchanged.
    The output dim is left unpadded (narrow lane-masked store is cheaper than a
    128-wide padded f32 writeback).
    """
    w_in, b_in = params[0], params[1]
    hidden = w_in.shape[-1]
    hidden_pad = _round_up(hidden, 128)
    dh = hidden_pad - hidden

    w_in_p = jnp.pad(w_in, ((0, 0), (0, dh)))
    b_in_p = jnp.pad(b_in, ((0, 0), (0, dh)))
    w_s = w_in_p[:state_dim]
    w_a = w_in_p[state_dim:state_dim + action_dim]
    w_g = w_in_p[state_dim + action_dim:]

    prep = [w_s.astype(weight_dtype), w_a.astype(weight_dtype),
            w_g.astype(weight_dtype), b_in_p.astype(jnp.float32)]

    n_hidden = (len(params) - 4) // 2
    for i in range(n_hidden):
        w, b = params[2 + 2 * i], params[3 + 2 * i]
        w_p = jnp.pad(w, ((0, dh), (0, dh)))
        b_p = jnp.pad(b, ((0, 0), (0, dh)))
        prep += [w_p.astype(weight_dtype), b_p.astype(jnp.float32)]

    w_out, b_out = params[-2], params[-1]
    out_dim = w_out.shape[-1]
    w_out_p = jnp.pad(w_out, ((0, dh), (0, 0)))
    prep += [w_out_p.astype(weight_dtype), b_out.astype(jnp.float32)]
    return prep, out_dim


# ----------------------------------------------------------------------------
# Plain-JAX reference (same bf16-matmul / f32-accumulate numerics)
# ----------------------------------------------------------------------------
def reference_forward(state, action, goal, params, hidden_layers, compute_dtype):
    x = jnp.concatenate([state, action, goal], axis=1)
    h = jnp.dot(x.astype(compute_dtype), params[0].astype(compute_dtype),
                preferred_element_type=jnp.float32) + params[1]
    h = jnp.maximum(h, 0.0)
    idx = 2
    for _ in range(hidden_layers):
        h = jnp.dot(h.astype(compute_dtype), params[idx].astype(compute_dtype),
                    preferred_element_type=jnp.float32) + params[idx + 1]
        h = jnp.maximum(h, 0.0)
        idx += 2
    return jnp.dot(h.astype(compute_dtype), params[idx].astype(compute_dtype),
                   preferred_element_type=jnp.float32) + params[idx + 1]


# ----------------------------------------------------------------------------
if __name__ == "__main__":
    batch = 2
    state_dim, action_dim, goal_dim = 10, 4, 6
    input_size = state_dim + action_dim + goal_dim   # 20
    hidden_size = 32
    hidden_layers = 2
    output_size = 1
    compute_dtype = jnp.bfloat16

    key = jax.random.PRNGKey(0)
    k_s, k_a, k_g, k_p, k_s2, k_a2, k_g2 = jax.random.split(key, 7)

    params = init_critic_params(k_p, input_size, hidden_size,
                                hidden_layers, output_size)
    prep_params, out_dim = prepare_critic_params(
        params, state_dim, action_dim, goal_dim, weight_dtype=compute_dtype)

    fwd = jax.jit(functools.partial(
        critic_forward, num_hidden_layers=hidden_layers, out_dim=out_dim,
        tile_m=1024, compute_dtype=compute_dtype))

    # --- small (demo) shapes ---
    state = jax.random.normal(k_s, (batch, state_dim), jnp.float32)
    action = jax.random.normal(k_a, (batch, action_dim), jnp.float32)
    goal = jax.random.normal(k_g, (batch, goal_dim), jnp.float32)

    out = fwd(state, action, goal, prep_params)
    jax.block_until_ready(out)
    ref = reference_forward(state, action, goal, params, hidden_layers,
                            compute_dtype)
    assert out.shape == (batch, output_size)
    assert jnp.allclose(out, ref, atol=2e-2, rtol=2e-2)

    # --- larger batch: exercises a multi-step "parallel" batch grid ---
    big = 512
    state2 = jax.random.normal(k_s2, (big, state_dim), jnp.float32)
    action2 = jax.random.normal(k_a2, (big, action_dim), jnp.float32)
    goal2 = jax.random.normal(k_g2, (big, goal_dim), jnp.float32)

    out2 = fwd(state2, action2, goal2, prep_params)
    jax.block_until_ready(out2)
    ref2 = reference_forward(state2, action2, goal2, params, hidden_layers,
                             compute_dtype)
    assert out2.shape == (big, output_size)
    assert jnp.allclose(out2, ref2, atol=2e-2, rtol=2e-2)

    print("KERNEL_OK")
</pallas_src>

<mosaic_0001>
module attributes {stable_mosaic.version = 11 : i64} {
  func.func @kernel(%arg0: i32, %arg1: memref<2x10xf32, #tpu.memory_space<vmem>>, %arg2: memref<2x4xf32, #tpu.memory_space<vmem>>, %arg3: memref<2x6xf32, #tpu.memory_space<vmem>>, %arg4: memref<10x128xbf16, #tpu.memory_space<vmem>>, %arg5: memref<4x128xbf16, #tpu.memory_space<vmem>>, %arg6: memref<6x128xbf16, #tpu.memory_space<vmem>>, %arg7: memref<1x128xf32, #tpu.memory_space<vmem>>, %arg8: memref<128x128xbf16, #tpu.memory_space<vmem>>, %arg9: memref<1x128xf32, #tpu.memory_space<vmem>>, %arg10: memref<128x128xbf16, #tpu.memory_space<vmem>>, %arg11: memref<1x128xf32, #tpu.memory_space<vmem>>, %arg12: memref<128x1xbf16, #tpu.memory_space<vmem>>, %arg13: memref<1x1xf32, #tpu.memory_space<vmem>>, %arg14: memref<2x1xf32, #tpu.memory_space<vmem>>) attributes {dimension_semantics = [#tpu.dimension_semantics<parallel>], iteration_bounds = array<i64: 1>, scalar_prefetch = 0 : i64, scratch_operands = 0 : i64, tpu.core_type = #tpu.core_type<tc>, window_params = [{transform_indices = @transform_0, window_bounds = array<i64: 2, 10>}, {transform_indices = @transform_1, window_bounds = array<i64: 2, 4>}, {transform_indices = @transform_2, window_bounds = array<i64: 2, 6>}, {pipeline_mode = #tpu.pipeline_mode<synchronous>, transform_indices = @transform_3, window_bounds = array<i64: 10, 128>}, {pipeline_mode = #tpu.pipeline_mode<synchronous>, transform_indices = @transform_4, window_bounds = array<i64: 4, 128>}, {pipeline_mode = #tpu.pipeline_mode<synchronous>, transform_indices = @transform_5, window_bounds = array<i64: 6, 128>}, {pipeline_mode = #tpu.pipeline_mode<synchronous>, transform_indices = @transform_6, window_bounds = array<i64: 1, 128>}, {pipeline_mode = #tpu.pipeline_mode<synchronous>, transform_indices = @transform_7, window_bounds = array<i64: 128, 128>}, {pipeline_mode = #tpu.pipeline_mode<synchronous>, transform_indices = @transform_8, window_bounds = array<i64: 1, 128>}, {pipeline_mode = #tpu.pipeline_mode<synchronous>, transform_indices = @transform_9, window_bounds = array<i64: 128, 128>}, {pipeline_mode = #tpu.pipeline_mode<synchronous>, transform_indices = @transform_10, window_bounds = array<i64: 1, 128>}, {pipeline_mode = #tpu.pipeline_mode<synchronous>, transform_indices = @transform_11, window_bounds = array<i64: 128, 1>}, {pipeline_mode = #tpu.pipeline_mode<synchronous>, transform_indices = @transform_12, window_bounds = array<i64: 1, 1>}, {transform_indices = @transform_13, window_bounds = array<i64: 2, 1>}]} {
    %c0 = arith.constant 0 : index
    %c0_0 = arith.constant 0 : index
    %0 = vector.load %arg1[%c0, %c0_0] : memref<2x10xf32, #tpu.memory_space<vmem>>, vector<2x10xf32>
    %1 = arith.truncf %0 : vector<2x10xf32> to vector<2x10xbf16>
    %c0_1 = arith.constant 0 : index
    %c0_2 = arith.constant 0 : index
    %2 = vector.load %arg4[%c0_1, %c0_2] : memref<10x128xbf16, #tpu.memory_space<vmem>>, vector<10x128xbf16>
    %cst = arith.constant dense<0.000000e+00> : vector<2x128xf32>
    %3 = tpu.matmul %1, %2, %cst {dimension_numbers = #tpu.dot_dimension_numbers<[1], [0], [0], [1], [0, 0, 1, 1], [], []>} : vector<2x10xbf16>, vector<10x128xbf16>, vector<2x128xf32> -> vector<2x128xf32>
    %c0_3 = arith.constant 0 : index
    %c0_4 = arith.constant 0 : index
    %4 = vector.load %arg2[%c0_3, %c0_4] : memref<2x4xf32, #tpu.memory_space<vmem>>, vector<2x4xf32>
    %5 = arith.truncf %4 : vector<2x4xf32> to vector<2x4xbf16>
    %c0_5 = arith.constant 0 : index
    %c0_6 = arith.constant 0 : index
    %6 = vector.load %arg5[%c0_5, %c0_6] : memref<4x128xbf16, #tpu.memory_space<vmem>>, vector<4x128xbf16>
    %cst_7 = arith.constant dense<0.000000e+00> : vector<2x128xf32>
    %7 = tpu.matmul %5, %6, %cst_7 {dimension_numbers = #tpu.dot_dimension_numbers<[1], [0], [0], [1], [0, 0, 1, 1], [], []>} : vector<2x4xbf16>, vector<4x128xbf16>, vector<2x128xf32> -> vector<2x128xf32>
    %8 = arith.addf %3, %7 : vector<2x128xf32>
    %c0_8 = arith.constant 0 : index
    %c0_9 = arith.constant 0 : index
    %9 = vector.load %arg3[%c0_8, %c0_9] : memref<2x6xf32, #tpu.memory_space<vmem>>, vector<2x6xf32>
    %10 = arith.truncf %9 : vector<2x6xf32> to vector<2x6xbf16>
    %c0_10 = arith.constant 0 : index
    %c0_11 = arith.constant 0 : index
    %11 = vector.load %arg6[%c0_10, %c0_11] : memref<6x128xbf16, #tpu.memory_space<vmem>>, vector<6x128xbf16>
    %cst_12 = arith.constant dense<0.000000e+00> : vector<2x128xf32>
    %12 = tpu.matmul %10, %11, %cst_12 {dimension_numbers = #tpu.dot_dimension_numbers<[1], [0], [0], [1], [0, 0, 1, 1], [], []>} : vector<2x6xbf16>, vector<6x128xbf16>, vector<2x128xf32> -> vector<2x128xf32>
    %13 = arith.addf %8, %12 : vector<2x128xf32>
    %c0_13 = arith.constant 0 : index
    %c0_14 = arith.constant 0 : index
    %14 = vector.load %arg7[%c0_13, %c0_14] : memref<1x128xf32, #tpu.memory_space<vmem>>, vector<1x128xf32>
    %15 = vector.broadcast %14 : vector<1x128xf32> to vector<2x128xf32>
    %16 = arith.addf %13, %15 : vector<2x128xf32>
    %cst_15 = arith.constant 0.000000e+00 : f32
    %17 = vector.broadcast %cst_15 : f32 to vector<2x128xf32>
    %18 = arith.maximumf %16, %17 : vector<2x128xf32>
    %19 = arith.truncf %18 : vector<2x128xf32> to vector<2x128xbf16>
    %c0_16 = arith.constant 0 : index
    %c0_17 = arith.constant 0 : index
    %20 = vector.load %arg8[%c0_16, %c0_17] : memref<128x128xbf16, #tpu.memory_space<vmem>>, vector<128x128xbf16>
    %cst_18 = arith.constant dense<0.000000e+00> : vector<2x128xf32>
    %21 = tpu.matmul %19, %20, %cst_18 {dimension_numbers = #tpu.dot_dimension_numbers<[1], [0], [0], [1], [0, 0, 1, 1], [], []>} : vector<2x128xbf16>, vector<128x128xbf16>, vector<2x128xf32> -> vector<2x128xf32>
    %c0_19 = arith.constant 0 : index
    %c0_20 = arith.constant 0 : index
    %22 = vector.load %arg9[%c0_19, %c0_20] : memref<1x128xf32, #tpu.memory_space<vmem>>, vector<1x128xf32>
    %23 = vector.broadcast %22 : vector<1x128xf32> to vector<2x128xf32>
    %24 = arith.addf %21, %23 : vector<2x128xf32>
    %cst_21 = arith.constant 0.000000e+00 : f32
    %25 = vector.broadcast %cst_21 : f32 to vector<2x128xf32>
    %26 = arith.maximumf %24, %25 : vector<2x128xf32>
    %27 = arith.truncf %26 : vector<2x128xf32> to vector<2x128xbf16>
    %c0_22 = arith.constant 0 : index
    %c0_23 = arith.constant 0 : index
    %28 = vector.load %arg10[%c0_22, %c0_23] : memref<128x128xbf16, #tpu.memory_space<vmem>>, vector<128x128xbf16>
    %cst_24 = arith.constant dense<0.000000e+00> : vector<2x128xf32>
    %29 = tpu.matmul %27, %28, %cst_24 {dimension_numbers = #tpu.dot_dimension_numbers<[1], [0], [0], [1], [0, 0, 1, 1], [], []>} : vector<2x128xbf16>, vector<128x128xbf16>, vector<2x128xf32> -> vector<2x128xf32>
    %c0_25 = arith.constant 0 : index
    %c0_26 = arith.constant 0 : index
    %30 = vector.load %arg11[%c0_25, %c0_26] : memref<1x128xf32, #tpu.memory_space<vmem>>, vector<1x128xf32>
    %31 = vector.broadcast %30 : vector<1x128xf32> to vector<2x128xf32>
    %32 = arith.addf %29, %31 : vector<2x128xf32>
    %cst_27 = arith.constant 0.000000e+00 : f32
    %33 = vector.broadcast %cst_27 : f32 to vector<2x128xf32>
    %34 = arith.maximumf %32, %33 : vector<2x128xf32>
    %35 = arith.truncf %34 : vector<2x128xf32> to vector<2x128xbf16>
    %c0_28 = arith.constant 0 : index
    %c0_29 = arith.constant 0 : index
    %36 = vector.load %arg12[%c0_28, %c0_29] : memref<128x1xbf16, #tpu.memory_space<vmem>>, vector<128x1xbf16>
    %cst_30 = arith.constant dense<0.000000e+00> : vector<2x1xf32>
    %37 = tpu.matmul %35, %36, %cst_30 {dimension_numbers = #tpu.dot_dimension_numbers<[1], [0], [0], [1], [0, 0, 1, 1], [], []>} : vector<2x128xbf16>, vector<128x1xbf16>, vector<2x1xf32> -> vector<2x1xf32>
    %c0_31 = arith.constant 0 : index
    %c0_32 = arith.constant 0 : index
    %38 = vector.load %arg13[%c0_31, %c0_32] : memref<1x1xf32, #tpu.memory_space<vmem>>, vector<1x1xf32>
    %39 = vector.broadcast %38 : vector<1x1xf32> to vector<2x1xf32>
    %40 = arith.addf %37, %39 : vector<2x1xf32>
    %c0_33 = arith.constant 0 : index
    %c0_34 = arith.constant 0 : index
    %41 = vector.load %arg14[%c0_33, %c0_34] : memref<2x1xf32, #tpu.memory_space<vmem>>, vector<2x1xf32>
    tpu.vector_store %arg14[%c0_33, %c0_34], %40 {strides = array<i32>} : memref<2x1xf32, #tpu.memory_space<vmem>>, vector<2x1xf32>,
    return
  }
  func.func @transform_0(%arg0: i32) -> (i32, i32) {
    %c0_i32 = arith.constant 0 : i32
    %c0_i32_0 = arith.constant 0 : i32
    return %arg0, %c0_i32 : i32, i32
  }
  func.func @transform_1(%arg0: i32) -> (i32, i32) {
    %c0_i32 = arith.constant 0 : i32
    %c0_i32_0 = arith.constant 0 : i32
    return %arg0, %c0_i32 : i32, i32
  }
  func.func @transform_2(%arg0: i32) -> (i32, i32) {
    %c0_i32 = arith.constant 0 : i32
    %c0_i32_0 = arith.constant 0 : i32
    return %arg0, %c0_i32 : i32, i32
  }
  func.func @transform_3(%arg0: i32) -> (i32, i32) {
    %c0_i32 = arith.constant 0 : i32
    %c0_i32_0 = arith.constant 0 : i32
    %c0_i32_1 = arith.constant 0 : i32
    return %c0_i32, %c0_i32_0 : i32, i32
  }
  func.func @transform_4(%arg0: i32) -> (i32, i32) {
    %c0_i32 = arith.constant 0 : i32
    %c0_i32_0 = arith.constant 0 : i32
    %c0_i32_1 = arith.constant 0 : i32
    return %c0_i32, %c0_i32_0 : i32, i32
  }
  func.func @transform_5(%arg0: i32) -> (i32, i32) {
    %c0_i32 = arith.constant 0 : i32
    %c0_i32_0 = arith.constant 0 : i32
    %c0_i32_1 = arith.constant 0 : i32
    return %c0_i32, %c0_i32_0 : i32, i32
  }
  func.func @transform_6(%arg0: i32) -> (i32, i32) {
    %c0_i32 = arith.constant 0 : i32
    %c0_i32_0 = arith.constant 0 : i32
    %c0_i32_1 = arith.constant 0 : i32
    return %c0_i32, %c0_i32_0 : i32, i32
  }
  func.func @transform_7(%arg0: i32) -> (i32, i32) {
    %c0_i32 = arith.constant 0 : i32
    %c0_i32_0 = arith.constant 0 : i32
    %c0_i32_1 = arith.constant 0 : i32
    return %c0_i32, %c0_i32_0 : i32, i32
  }
  func.func @transform_8(%arg0: i32) -> (i32, i32) {
    %c0_i32 = arith.constant 0 : i32
    %c0_i32_0 = arith.constant 0 : i32
    %c0_i32_1 = arith.constant 0 : i32
    return %c0_i32, %c0_i32_0 : i32, i32
  }
  func.func @transform_9(%arg0: i32) -> (i32, i32) {
    %c0_i32 = arith.constant 0 : i32
    %c0_i32_0 = arith.constant 0 : i32
    %c0_i32_1 = arith.constant 0 : i32
    return %c0_i32, %c0_i32_0 : i32, i32
  }
  func.func @transform_10(%arg0: i32) -> (i32, i32) {
    %c0_i32 = arith.constant 0 : i32
    %c0_i32_0 = arith.constant 0 : i32
    %c0_i32_1 = arith.constant 0 : i32
    return %c0_i32, %c0_i32_0 : i32, i32
  }
  func.func @transform_11(%arg0: i32) -> (i32, i32) {
    %c0_i32 = arith.constant 0 : i32
    %c0_i32_0 = arith.constant 0 : i32
    %c0_i32_1 = arith.constant 0 : i32
    return %c0_i32, %c0_i32_0 : i32, i32
  }
  func.func @transform_12(%arg0: i32) -> (i32, i32) {
    %c0_i32 = arith.constant 0 : i32
    %c0_i32_0 = arith.constant 0 : i32
    %c0_i32_1 = arith.constant 0 : i32
    return %c0_i32, %c0_i32_0 : i32, i32
  }
  func.func @transform_13(%arg0: i32) -> (i32, i32) {
    %c0_i32 = arith.constant 0 : i32
    %c0_i32_0 = arith.constant 0 : i32
    return %arg0, %c0_i32 : i32, i32
  }
}

</mosaic_0001>

<bundles_post_ra>
// kernel: critic_forward.1
= control target key start
LH: loop header
LB: loop body
LE: loop exit
PB: predicated region body
PF: predicated region fallthrough
CT: control target
= control target key end

     0   :  { %s979_s0 = inlined_call_operand.vmem [shape: f32[2,10], index: 0, kind: input, shape index: {}]   ;;  %s980_s1 = inlined_call_operand.vmem [shape: f32[2,4], index: 1, kind: input, shape index: {}]   ;;  %s981_s2 = inlined_call_operand.vmem [shape: f32[2,6], index: 2, kind: input, shape index: {}]   ;;  %s982_s3 = inlined_call_operand.vmem [shape: bf16[10,128], index: 3, kind: input, shape index: {}]   ;;  %s983_s4 = inlined_call_operand.vmem [shape: bf16[4,128], index: 4, kind: input, shape index: {}]   ;;  %s984_s5 = inlined_call_operand.vmem [shape: bf16[6,128], index: 5, kind: input, shape index: {}]   ;;  %s985_s6 = inlined_call_operand.vmem [shape: f32[1,128], index: 6, kind: input, shape index: {}]   ;;  %s986_s7 = inlined_call_operand.vmem [shape: bf16[128,128], index: 7, kind: input, shape index: {}]   ;;  %s987_s8 = inlined_call_operand.vmem [shape: f32[1,128], index: 8, kind: input, shape index: {}]   ;;  %s988_s9 = inlined_call_operand.hbm [shape: bf16[128,128], index: 9, kind: input, shape index: {}]   ;;  %s989_s10 = inlined_call_operand.vmem [shape: f32[1,128], index: 10, kind: input, shape index: {}]   ;;  %s990_s11 = inlined_call_operand.vmem [shape: bf16[128,1], index: 11, kind: input, shape index: {}]   ;;  %s991_s12 = inlined_call_operand.<no memory space> [shape: f32[1,1], index: 12, kind: input, shape index: {}]   ;;  %s992_s13 = inlined_call_operand.vmem [shape: f32[2,1], index: 13, kind: output, shape index: {}]  }
   0x1   :  { %v18_v0 = vstv %s991_s12 }
   0x2   :  { %19 = vst [vmem:[#allocation2] sm:$0x1] %v18_v0 }
   0x3   :  { %20 = vsyncpa [#allocation4], 0  ;;  %s772_s27 = smov [#allocation3]   ;;  %s748_s14 = scalar_lea.hbm %s988_s9, 1024 }
   0x4   :  { %s44_s28 = sshll.u32 %s772_s27, 4  ;;  %p749_p0 = scmp.ne.s32.totalorder %s988_s9, %s748_s14  ;;  %s45_s28 = int_to_ptr.vmem [resolvable:$true] %s44_s28 }
   0x5   :  { %p752_p1 = scmp.lt.u32.totalorder %s748_s14, %s988_s9 }
   0x7   :  { %p754_p2 = pnand %p752_p1, %p749_p0 }
   0x9   :  { %757 = shalt.err (!%p754_p2)
}
   0xa   :  { %s758_s12 = scalar_lea.vmem %s45_s28, 1024  ;;  %p763_p4 = scmp.lt.s32.totalorder %s45_s28, %s45_s28 }
   0xb   :  { %p759_p3 = scmp.ne.s32.totalorder %s45_s28, %s758_s12  ;;  %p764_p5 = scmp.lt.s32.totalorder %s758_s12, %s758_s12 }
   0xd   :  { %p765_p6 = por %p764_p5, %p763_p4 }
   0xf   :  { %p766_p7 = pnand %p765_p6, %p759_p3 }
  0x11   :  { %769 = shalt.err (!%p766_p7)
}
  0x12   :  { %s773_s19 = smov 64   ;;  %s774_s20 = smov 4  }
  0x13   :  { %50 = dma.hbm_to_vmem [thread:$0]  %s988_s9, 1024, %s45_s28, [#allocation4], %s773_s19, %s773_s19, %s774_s20  }
  0x14   :  { %770 = dma.done.wait [#allocation4], 1024  }
  0x15   :  { %771 = vsyncadd [#allocation4], 4294966272  ;;  %v775_v1 = vmov 0.0   ;;  %vm776_vm0 = vmmov 0   ;;  %vm72_vm1 = vcmask 1041408   ;;  %vm125_vm2 = vcmask 1044480  }
  0x16   :  { %640 = vmatprep.subr.bf16.mxu0 %v775_v1  ;;  %642 = vmatprep.mubr.msk.bf16.mxu0 %vm776_vm0, %v775_v1  ;;  %vm176_vm3 = vcmask 1042432   ;;  %v67_v2 = vld [vmem:[%s983_s4] sm:$0x3]  ;;  %vm68_vm4 = vcmask 31744   ;;  %vm121_vm5 = vcmask 80896   ;;  %v725_v12 = vld [vmem:[%s986_s7 + $0x8] sm:$0xff]  }
  0x17   :  { %658 = vmatprep.subr.bf16.mxu1 %v775_v1  ;;  %674 = vmatprep.mubr.msk.bf16.mxu1 %vm776_vm0, %v775_v1  ;;  %v65_v3 = vld [vmem:[%s980_s1] sm:$0x3]  ;;  %v74_v4 = vsel %vm72_vm1, %v67_v2, 0  ;;  %vm172_vm6 = vcmask 48128   ;;  %v726_v16 = vld [vmem:[%s986_s7 + $0x10] sm:$0xff]   ;;  %v727_v17 = vld [vmem:[%s986_s7 + $0x18] sm:$0xff]  }
  0x18   :  { %v66_v5 = vpack.c.bf16 %v65_v3, %v65_v3  ;;  %v723_v6 = vld [vmem:[%s982_s3] sm:$0x1f]   ;;  %641 = vmatpush3.bf16.msra.mxu0 %v74_v4  ;;  %v729_v19 = vld [vmem:[%s986_s7 + $0x28] sm:$0xff]   ;;  %v730_v20 = vld [vmem:[%s986_s7 + $0x30] sm:$0xff]   ;;  %vm568_vm7 = vcmask 1024  }
  0x19   :  { %v724_v7 = vld [vmem:[%s986_s7] sm:$0xff]   ;;  %646 = vmatprep.subr.bf16.mxu0 %v775_v1  ;;  %v127_v9 = vsel %vm125_vm2, %v723_v6, 0  ;;  %v731_v21 = vld [vmem:[%s986_s7 + $0x38] sm:$0xff]   ;;  %v733_v23 = vld [vmem:[#allocation3 + $0x8] sm:$0xff]  }
  0x1a   :  { %v171_v8 = vld [vmem:[%s984_s5] sm:$0x7]  ;;  %659 = vmatpush3.bf16.msra.mxu1 %v724_v7  ;;  %v734_v24 = vld [vmem:[#allocation3 + $0x10] sm:$0xff]   ;;  %v737_v27 = vld [vmem:[#allocation3 + $0x28] sm:$0xff]  }
  0x1b   :  { %v61_v10 = vld [vmem:[%s979_s0] sm:$0x3]  ;;  %v178_v11 = vsel %vm176_vm3, %v171_v8, 0  ;;  %660 = vmatprep.subr.bf16.mxu1 %v775_v1  ;;  %643 = vmatmul.mubr.msk.bf16.vlgmr.msra.gmra.mrb[0].mxu0 %vm68_vm4, %v66_v5  ;;  %v738_v46 = vld [vmem:[#allocation3 + $0x30] sm:$0xff]   ;;  %v741_v49 = vld [vmem:[%s990_s11 + $0x8] sm:$0xff]  }
  0x1c   :  { %647 = vmatpush3.bf16.msra.mxu0 %v127_v9  ;;  %648 = vmatprep.mubr.msk.bf16.mxu0 %vm776_vm0, %v775_v1  ;;  %v62_v13 = vpack.c.bf16 %v61_v10, %v61_v10  ;;  %v169_v14 = vld [vmem:[%s981_s2] sm:$0x3]  ;;  %v742_v50 = vld [vmem:[%s990_s11 + $0x10] sm:$0xff]   ;;  %v743_v51 = vld [vmem:[%s990_s11 + $0x18] sm:$0xff]  }
  0x1d   :  { %652 = vmatprep.subr.bf16.mxu0 %v775_v1  ;;  %v170_v15 = vpack.c.bf16 %v169_v14, %v169_v14  ;;  %v728_v18 = vld [vmem:[%s986_s7 + $0x20] sm:$0xff]   ;;  %v745_v53 = vld [vmem:[%s990_s11 + $0x28] sm:$0xff]   ;;  %v746_v62 = vld [vmem:[%s990_s11 + $0x30] sm:$0xff]  }
  0x1e   :  { %661 = vmatpush3.bf16.msra.mxu1 %v725_v12  ;;  %v732_v22 = vld [vmem:[#allocation3] sm:$0xff]   ;;  %v735_v25 = vld [vmem:[#allocation3 + $0x18] sm:$0xff]  }
  0x1f   :  { %662 = vmatprep.subr.bf16.mxu1 %v775_v1  ;;  %v736_v26 = vld [vmem:[#allocation3 + $0x20] sm:$0xff]   ;;  %v579_v38 = vld [vmem:[%s985_s6] ss:$0 sm:$0xff]  ;;  %v747_v63 = vld [vmem:[%s990_s11 + $0x38] sm:$0xff]  }
  0x20   :  { %v739_v47 = vld [vmem:[#allocation3 + $0x38] sm:$0xff]  }
  0x21   :  { %v740_v48 = vld [vmem:[%s990_s11] sm:$0xff]  }
  0x22   :  { %663 = vmatpush3.bf16.msra.mxu1 %v726_v16  ;;  %v744_v52 = vld [vmem:[%s990_s11 + $0x20] sm:$0xff]  }
  0x23   :  { %649 = vmatmul.mubr.msk.bf16.vlgmr.msra.gmra.mrb[4].mxu0 %vm121_vm5, %v62_v13  ;;  %664 = vmatprep.subr.bf16.mxu1 %v775_v1  ;;  %v580_v54 = vld [vmem:[%s987_s8] ss:$0 sm:$0xff] }
  0x24   :  { %653 = vmatpush3.bf16.msra.mxu0 %v178_v11  ;;  %654 = vmatprep.mubr.msk.bf16.mxu0 %vm776_vm0, %v775_v1  ;;  %v589_v0 = vld [vmem:[%s989_s10] ss:$0 sm:$0xff] }
  0x25   :  { %678 = vmatprep.subr.bf16.mxu0 %v775_v1  ;;  %v598_v9 = vld [vmem:[#allocation2] ss:$0 sm:$0xff] }
  0x26   :  { %665 = vmatpush3.bf16.msra.mxu1 %v727_v17 }
  0x27   :  { %666 = vmatprep.subr.bf16.mxu1 %v775_v1 }
  0x2a   :  { %667 = vmatpush3.bf16.msra.mxu1 %v728_v18 }
  0x2b   :  { %655 = vmatmul.mubr.msk.bf16.vlgmr.msra.gmra.mrb[8].mxu0 %vm172_vm6, %v170_v15  ;;  %668 = vmatprep.subr.bf16.mxu1 %v775_v1 }
  0x2c   :  { %694 = vmatprep.mubr.msk.bf16.mxu0 %vm776_vm0, %v775_v1  ;;  %679 = vmatpush3.bf16.msra.mxu0 %v732_v22 }
  0x2d   :  { %680 = vmatprep.subr.bf16.mxu0 %v775_v1 }
  0x2e   :  { %669 = vmatpush3.bf16.msra.mxu1 %v729_v19 }
  0x2f   :  { %670 = vmatprep.subr.bf16.mxu1 %v775_v1 }
  0x30   :  { %681 = vmatpush3.bf16.msra.mxu0 %v733_v23 }
  0x31   :  { %682 = vmatprep.subr.bf16.mxu0 %v775_v1 }
  0x32   :  { %671 = vmatpush3.bf16.msra.mxu1 %v730_v20 }
  0x33   :  { %672 = vmatprep.subr.bf16.mxu1 %v775_v1 }
  0x34   :  { %683 = vmatpush3.bf16.msra.mxu0 %v734_v24 }
  0x35   :  { %684 = vmatprep.subr.bf16.mxu0 %v775_v1 }
  0x36   :  { %673 = vmatpush3.bf16.msra.mxu1 %v731_v21 }
  0x37   :  { %698 = vmatprep.subr.bf16.mxu1 %v775_v1 }
  0x38   :  { %685 = vmatpush3.bf16.msra.mxu0 %v735_v25 }
  0x39   :  { %686 = vmatprep.subr.bf16.mxu0 %v775_v1 }
  0x3c   :  { %687 = vmatpush3.bf16.msra.mxu0 %v736_v26 }
  0x3d   :  { %688 = vmatprep.subr.bf16.mxu0 %v775_v1 }
  0x40   :  { %689 = vmatpush3.bf16.msra.mxu0 %v737_v27 }
  0x41   :  { %690 = vmatprep.subr.bf16.mxu0 %v775_v1 }
  0x44   :  { %691 = vmatpush3.bf16.msra.mxu0 %v738_v46 }
  0x45   :  { %692 = vmatprep.subr.bf16.mxu0 %v775_v1 }
  0x48   :  { %693 = vmatpush3.bf16.msra.mxu0 %v739_v47 }
  0xee   :  { %v110_v28 = vpop.f32.mrb[0].mxu0 }
  0xef   :  { %v644_v29 = vpop.f32.mrb[1].mxu0 }
  0xf0   :  { %v113_v30 = vpop.f32.mrb[2].mxu0 }
  0xf1   :  { %v645_v31 = vpop.f32.mrb[3].mxu0 }
  0xf6   :  { %v163_v32 = vpop.f32.mrb[4].mxu0 }
  0xf7   :  { %v164_v33 = vadd.f32 %v163_v32, %v110_v28  ;;  %v650_v34 = vpop.f32.mrb[5].mxu0 }
  0xf8   :  { %v166_v35 = vpop.f32.mrb[6].mxu0 }
  0xf9   :  { %v651_v36 = vpop.f32.mrb[7].mxu0 }
  0xfe   :  { %v214_v37 = vpop.f32.mrb[8].mxu0 }
  0xff   :  { %v220_v39 = vadd.f32 %v214_v37, %v164_v33  ;;  %v656_v40 = vpop.f32.mrb[9].mxu0 }
 0x100   :  { %v217_v41 = vpop.f32.mrb[10].mxu0 }
 0x101   :  { %v228_v42 = vadd.f32 %v579_v38, %v220_v39  ;;  %v657_v43 = vpop.f32.mrb[11].mxu0 }
 0x103   :  { %v229_v44 = vmax.f32 %v228_v42, 0.0 }
 0x105   :  { %v230_v45 = vpack.c.bf16 %v229_v44, %v229_v44 }
 0x107   :  { %675 = vmatmul.mubr.bf16.vlgmr.msra.gmra.mrb[0].mxu1 %v230_v45 }
 0x108   :  { %714 = vmatprep.mubr.msk.bf16.mxu1 %vm776_vm0, %v775_v1  ;;  %699 = vmatpush3.bf16.msra.mxu1 %v740_v48 }
 0x109   :  { %700 = vmatprep.subr.bf16.mxu1 %v775_v1 }
 0x10c   :  { %701 = vmatpush3.bf16.msra.mxu1 %v741_v49 }
 0x10d   :  { %702 = vmatprep.subr.bf16.mxu1 %v775_v1 }
 0x110   :  { %703 = vmatpush3.bf16.msra.mxu1 %v742_v50 }
 0x111   :  { %704 = vmatprep.subr.bf16.mxu1 %v775_v1 }
 0x114   :  { %705 = vmatpush3.bf16.msra.mxu1 %v743_v51 }
 0x115   :  { %706 = vmatprep.subr.bf16.mxu1 %v775_v1 }
 0x118   :  { %707 = vmatpush3.bf16.msra.mxu1 %v744_v52 }
 0x119   :  { %708 = vmatprep.subr.bf16.mxu1 %v775_v1 }
 0x11c   :  { %709 = vmatpush3.bf16.msra.mxu1 %v745_v53 }
 0x11d   :  { %710 = vmatprep.subr.bf16.mxu1 %v775_v1 }
 0x120   :  { %711 = vmatpush3.bf16.msra.mxu1 %v746_v62 }
 0x121   :  { %712 = vmatprep.subr.bf16.mxu1 %v775_v1 }
 0x124   :  { %713 = vmatpush3.bf16.msra.mxu1 %v747_v63 }
 0x1da   :  { %v336_v55 = vpop.f32.mrb[0].mxu1 }
 0x1db   :  { %v337_v56 = vadd.f32 %v580_v54, %v336_v55  ;;  %v676_v57 = vpop.f32.mrb[1].mxu1 }
 0x1dc   :  { %v339_v58 = vpop.f32.mrb[2].mxu1 }
 0x1dd   :  { %v342_v59 = vmax.f32 %v337_v56, 0.0  ;;  %v677_v60 = vpop.f32.mrb[3].mxu1 }
 0x1df   :  { %v343_v61 = vpack.c.bf16 %v342_v59, %v342_v59 }
 0x1e1   :  { %695 = vmatmul.mubr.bf16.vlgmr.msra.gmra.mrb[12].mxu0 %v343_v61 }
 0x2b4   :  { %v449_v2 = vpop.f32.mrb[12].mxu0 }
 0x2b5   :  { %v450_v3 = vadd.f32 %v589_v0, %v449_v2  ;;  %v696_v4 = vpop.f32.mrb[13].mxu0 }
 0x2b6   :  { %v452_v5 = vpop.f32.mrb[14].mxu0 }
 0x2b7   :  { %v455_v6 = vmax.f32 %v450_v3, 0.0  ;;  %v697_v7 = vpop.f32.mrb[15].mxu0 }
 0x2b9   :  { %v456_v8 = vpack.c.bf16 %v455_v6, %v455_v6 }
 0x2bb   :  { %715 = vmatmul.mubr.bf16.vlgmr.msra.gmra.mrb[4].mxu1 %v456_v8 }
 0x38e   :  { %v562_v10 = vpop.f32.mrb[4].mxu1 }
 0x38f   :  { %v563_v1 = vadd.f32 %v598_v9, %v562_v10  ;;  %v716_v11 = vpop.f32.mrb[5].mxu1 }
 0x390   :  { %v565_v12 = vpop.f32.mrb[6].mxu1 }
 0x391   :  { %569 = vst.msk [vmem:[%s992_s13] sm:$0x3] %vm568_vm7, %v563_v1  ;;  %v717_v13 = vpop.f32.mrb[7].mxu1 }
 0x392   :  { %574 = vsyncpa [#allocation4], 1 }

</bundles_post_ra>
